<compile_context>
chip_gen: v6e
topology: v6e:2x2x1
jax: 0.10.0
libtpu: 0.0.40
codegen_flags: <defaults>
</compile_context>

<pallas_src>
import jax
import jax.numpy as jnp
from jax import lax
from jax.experimental import pallas as pl
from jax.experimental.pallas import tpu as pltpu


def attention_head_kernel(x_ref, mask_ref, wqkv_ref, o_ref):
    # x_ref:    (B, S, H) f32      activations
    # mask_ref: (B, S)    int32    1 = keep, 0 = masked position
    # wqkv_ref: (H, 3P)   bf16     fused weights, column blocks [Wk^T | (Wq*scale)^T | Wv^T]
    # o_ref:    (B, S, P) f32
    B, S, H = x_ref.shape
    P = o_ref.shape[-1]

    # Fused QKV projection with batch folded into M: one (B*S, H) @ (H, 3P) MXU push.
    # (B,S,H)->(B*S,H) only collapses leading dims (lane dim unchanged): layout no-op.
    x2d = x_ref[...].reshape(B * S, H).astype(jnp.bfloat16)
    qkv = jnp.dot(x2d, wqkv_ref[...], preferred_element_type=jnp.float32)  # (B*S, 3P) f32

    mask = mask_ref[...]                                   # (B, S) int32
    neg_inf = jnp.float32(-1000000000000.0)

    # B is tiny and static: unroll into plain 2-D dots (no batched-dot bookkeeping)
    # while preserving exact per-batch masking / softmax semantics.
    for b in range(B):
        lo = b * S
        keys = qkv[lo:lo + S, 0:P].astype(jnp.bfloat16)             # (S, P)
        queries = qkv[lo:lo + S, P:2 * P].astype(jnp.bfloat16)      # (S, P), scale pre-folded
        values = qkv[lo:lo + S, 2 * P:3 * P].astype(jnp.bfloat16)   # (S, P)

        # scores[i, j] = keys_i . queries_j * scale  (contract last axis of both,
        # no in-kernel transpose).
        scores = lax.dot_general(keys, queries, (((1,), (1,)), ((), ())),
                                 preferred_element_type=jnp.float32)        # (S, S) f32

        # Additive mask bias built in-kernel from the raw int mask (VPU cmp+select):
        # column j gets -1e12 where mask[b, j] == 0 — matches the PyTorch
        # `scores[b, :, pos] = -1e12` assignment; softmax is over the last axis.
        bias = jnp.where(mask[b:b + 1, :] == 0, neg_inf, jnp.float32(0.0))  # (1, S)
        scores = scores + bias

        # Numerically stable softmax, all in f32 (v5e has no bf16 VPU/EUP).
        m = jnp.max(scores, axis=-1, keepdims=True)
        e = jnp.exp(scores - m)
        weights = e * pl.reciprocal(jnp.sum(e, axis=-1, keepdims=True), approx=True)

        # TODO(synk): dropout on the attention weights is not applied
        # (inference / attention_probs_dropout_prob == 0 behaviour).

        hidden = jnp.dot(weights.astype(jnp.bfloat16), values,
                         preferred_element_type=jnp.float32)                # (S, P)
        o_ref[b] = hidden.astype(o_ref.dtype)


def prepare_attention_head_params(wk, wq, wv):
    """One-time parameter transform (hoist out of the forward path).

    wk/wq/wv: (P, H) in PyTorch nn.Linear convention (y = x @ W^T).
    Returns a (H, 3P) bf16 slab with column blocks [Wk^T | (Wq*scale)^T | Wv^T],
    where scale = 1/sqrt(P) is folded into the Q columns.
    """
    P = wk.shape[0]
    scale = jnp.float32(1.0 / (P ** 0.5))
    w_qkv = jnp.concatenate([wk.T, (wq * scale).T, wv.T], axis=1)
    return w_qkv.astype(jnp.bfloat16)


def attention_head(x, mask, w_qkv):
    """x: (B, S, H) f32, mask: (B, S) int {0,1}, w_qkv: prepared (H, 3P) bf16 weights."""
    B, S, H = x.shape
    P = w_qkv.shape[1] // 3
    return pl.pallas_call(
        attention_head_kernel,
        out_shape=jax.ShapeDtypeStruct((B, S, P), x.dtype),
        in_specs=[
            pl.BlockSpec(memory_space=pltpu.MemorySpace.VMEM),   # x (full block)
            pl.BlockSpec(memory_space=pltpu.MemorySpace.VMEM),   # raw int32 mask
            pl.BlockSpec(memory_space=pltpu.MemorySpace.VMEM),   # fused bf16 W_qkv
        ],
        out_specs=pl.BlockSpec(memory_space=pltpu.MemorySpace.VMEM),
    )(x, mask.astype(jnp.int32), w_qkv)


def attention_head_reference(x, mask, wk, wq, wv):
    """Pure-JAX f32 reference matching the PyTorch forward (eval mode)."""
    P = wk.shape[0]
    scale = 1.0 / (P ** 0.5)
    keys = x @ wk.T
    queries = x @ wq.T
    values = x @ wv.T
    scores = jnp.einsum("bip,bjp->bij", keys, queries) * scale
    col_mask = (mask == 0)[:, None, :]                    # mask the last (softmax) axis
    scores = jnp.where(col_mask, -1000000000000.0, scores)
    weights = jax.nn.softmax(scores, axis=2)
    return weights @ values


if __name__ == "__main__":
    # config: hidden_size=32, num_attention_heads=4 -> partial_size P=8
    B, S, H, NUM_HEADS = 2, 8, 32, 4
    P = H // NUM_HEADS

    key = jax.random.PRNGKey(0)
    kx, km, k1, k2, k3 = jax.random.split(key, 5)

    x = jax.random.normal(kx, (B, S, H), dtype=jnp.float32)
    # integer {0,1} mask; ensure a few zero (masked) positions exist
    mask = (jax.random.uniform(km, (B, S)) > 0.25).astype(jnp.int32)

    # nn.Linear default init: U(-1/sqrt(in_features), 1/sqrt(in_features))
    bound = 1.0 / (H ** 0.5)
    wk = jax.random.uniform(k1, (P, H), minval=-bound, maxval=bound, dtype=jnp.float32)
    wq = jax.random.uniform(k2, (P, H), minval=-bound, maxval=bound, dtype=jnp.float32)
    wv = jax.random.uniform(k3, (P, H), minval=-bound, maxval=bound, dtype=jnp.float32)

    # One-time weight transform, hoisted out of the per-call forward path.
    w_qkv = jax.block_until_ready(prepare_attention_head_params(wk, wq, wv))

    out = attention_head(x, mask, w_qkv)
    out = jax.block_until_ready(out)

    ref = attention_head_reference(x, mask, wk, wq, wv)
    assert out.shape == (B, S, P), out.shape
    # bf16 MXU operands + EUP approx reciprocal -> relaxed tolerance vs f32 reference
    assert jnp.allclose(out, ref, rtol=2e-2, atol=2e-2), "mismatch vs reference"

    print("KERNEL_OK")
</pallas_src>

<mosaic_0001>
module attributes {stable_mosaic.version = 11 : i64} {
  func.func @attention_head_kernel(%arg0: memref<2x8x32xf32, #tpu.memory_space<vmem>>, %arg1: memref<2x8xi32, #tpu.memory_space<vmem>>, %arg2: memref<32x24xbf16, #tpu.memory_space<vmem>>, %arg3: memref<2x8x8xf32, #tpu.memory_space<vmem>>) attributes {dimension_semantics = [], scalar_prefetch = 0 : i64, scratch_operands = 0 : i64, tpu.core_type = #tpu.core_type<tc>} {
    %c0 = arith.constant 0 : index
    %c0_0 = arith.constant 0 : index
    %c0_1 = arith.constant 0 : index
    %0 = vector.load %arg0[%c0, %c0_0, %c0_1] : memref<2x8x32xf32, #tpu.memory_space<vmem>>, vector<2x8x32xf32>
    %1 = vector.shape_cast %0 : vector<2x8x32xf32> to vector<16x32xf32>
    %2 = arith.truncf %1 : vector<16x32xf32> to vector<16x32xbf16>
    %c0_2 = arith.constant 0 : index
    %c0_3 = arith.constant 0 : index
    %3 = vector.load %arg2[%c0_2, %c0_3] : memref<32x24xbf16, #tpu.memory_space<vmem>>, vector<32x24xbf16>
    %cst = arith.constant dense<0.000000e+00> : vector<16x24xf32>
    %4 = tpu.matmul %2, %3, %cst {dimension_numbers = #tpu.dot_dimension_numbers<[1], [0], [0], [1], [0, 0, 1, 1], [], []>} : vector<16x32xbf16>, vector<32x24xbf16>, vector<16x24xf32> -> vector<16x24xf32>
    %c0_4 = arith.constant 0 : index
    %c0_5 = arith.constant 0 : index
    %5 = vector.load %arg1[%c0_4, %c0_5] : memref<2x8xi32, #tpu.memory_space<vmem>>, vector<2x8xi32>
    %6 = vector.extract_strided_slice %4 {offsets = [0, 0], sizes = [8, 8], strides = [1, 1]} : vector<16x24xf32> to vector<8x8xf32>
    %7 = arith.truncf %6 : vector<8x8xf32> to vector<8x8xbf16>
    %8 = vector.extract_strided_slice %4 {offsets = [0, 8], sizes = [8, 8], strides = [1, 1]} : vector<16x24xf32> to vector<8x8xf32>
    %9 = arith.truncf %8 : vector<8x8xf32> to vector<8x8xbf16>
    %10 = vector.extract_strided_slice %4 {offsets = [0, 16], sizes = [8, 8], strides = [1, 1]} : vector<16x24xf32> to vector<8x8xf32>
    %11 = arith.truncf %10 : vector<8x8xf32> to vector<8x8xbf16>
    %cst_6 = arith.constant dense<0.000000e+00> : vector<8x8xf32>
    %12 = tpu.matmul %7, %9, %cst_6 {dimension_numbers = #tpu.dot_dimension_numbers<[1], [1], [0], [0], [0, 0, 1, 0], [], []>} : vector<8x8xbf16>, vector<8x8xbf16>, vector<8x8xf32> -> vector<8x8xf32>
    %13 = vector.extract_strided_slice %5 {offsets = [0, 0], sizes = [1, 8], strides = [1, 1]} : vector<2x8xi32> to vector<1x8xi32>
    %c0_i32 = arith.constant 0 : i32
    %14 = vector.broadcast %c0_i32 : i32 to vector<1x8xi32>
    %15 = arith.cmpi eq, %13, %14 : vector<1x8xi32>
    %cst_7 = arith.constant -9.99999995E+11 : f32
    %cst_8 = arith.constant 0.000000e+00 : f32
    %16 = vector.broadcast %cst_7 : f32 to vector<1x8xf32>
    %17 = vector.broadcast %cst_8 : f32 to vector<1x8xf32>
    %18 = arith.select %15, %16, %17 : vector<1x8xi1>, vector<1x8xf32>
    %19 = vector.broadcast %18 : vector<1x8xf32> to vector<8x8xf32>
    %20 = arith.addf %12, %19 : vector<8x8xf32>
    %cst_9 = arith.constant dense<0xFF800000> : vector<8xf32>
    %21 = vector.multi_reduction <maximumf>, %20, %cst_9 [1] : vector<8x8xf32> to vector<8xf32>
    %22 = vector.shape_cast %21 : vector<8xf32> to vector<8x1xf32>
    %23 = vector.broadcast %22 : vector<8x1xf32> to vector<8x8xf32>
    %24 = arith.subf %20, %23 : vector<8x8xf32>
    %25 = math.exp %24 : vector<8x8xf32>
    %cst_10 = arith.constant dense<0.000000e+00> : vector<8xf32>
    %26 = vector.multi_reduction <add>, %25, %cst_10 [1] : vector<8x8xf32> to vector<8xf32>
    %27 = vector.shape_cast %26 : vector<8xf32> to vector<8x1xf32>
    %28 = tpu.reciprocal %27 {approx = true} : vector<8x1xf32> -> vector<8x1xf32>
    %29 = vector.broadcast %28 : vector<8x1xf32> to vector<8x8xf32>
    %30 = arith.mulf %25, %29 : vector<8x8xf32>
    %31 = arith.truncf %30 : vector<8x8xf32> to vector<8x8xbf16>
    %cst_11 = arith.constant dense<0.000000e+00> : vector<8x8xf32>
    %32 = tpu.matmul %31, %11, %cst_11 {dimension_numbers = #tpu.dot_dimension_numbers<[1], [0], [0], [1], [0, 0, 1, 1], [], []>} : vector<8x8xbf16>, vector<8x8xbf16>, vector<8x8xf32> -> vector<8x8xf32>
    %c0_12 = arith.constant 0 : index
    %c0_13 = arith.constant 0 : index
    %c0_14 = arith.constant 0 : index
    %33 = vector.load %arg3[%c0_12, %c0_13, %c0_14] : memref<2x8x8xf32, #tpu.memory_space<vmem>>, vector<1x8x8xf32>
    %34 = vector.shape_cast %33 : vector<1x8x8xf32> to vector<8x8xf32>
    %35 = vector.shape_cast %32 : vector<8x8xf32> to vector<1x8x8xf32>
    tpu.vector_store %arg3[%c0_12, %c0_13, %c0_14], %35 {strides = array<i32>} : memref<2x8x8xf32, #tpu.memory_space<vmem>>, vector<1x8x8xf32>,
    %36 = vector.extract_strided_slice %4 {offsets = [8, 0], sizes = [8, 8], strides = [1, 1]} : vector<16x24xf32> to vector<8x8xf32>
    %37 = arith.truncf %36 : vector<8x8xf32> to vector<8x8xbf16>
    %38 = vector.extract_strided_slice %4 {offsets = [8, 8], sizes = [8, 8], strides = [1, 1]} : vector<16x24xf32> to vector<8x8xf32>
    %39 = arith.truncf %38 : vector<8x8xf32> to vector<8x8xbf16>
    %40 = vector.extract_strided_slice %4 {offsets = [8, 16], sizes = [8, 8], strides = [1, 1]} : vector<16x24xf32> to vector<8x8xf32>
    %41 = arith.truncf %40 : vector<8x8xf32> to vector<8x8xbf16>
    %cst_15 = arith.constant dense<0.000000e+00> : vector<8x8xf32>
    %42 = tpu.matmul %37, %39, %cst_15 {dimension_numbers = #tpu.dot_dimension_numbers<[1], [1], [0], [0], [0, 0, 1, 0], [], []>} : vector<8x8xbf16>, vector<8x8xbf16>, vector<8x8xf32> -> vector<8x8xf32>
    %43 = vector.extract_strided_slice %5 {offsets = [1, 0], sizes = [1, 8], strides = [1, 1]} : vector<2x8xi32> to vector<1x8xi32>
    %c0_i32_16 = arith.constant 0 : i32
    %44 = vector.broadcast %c0_i32_16 : i32 to vector<1x8xi32>
    %45 = arith.cmpi eq, %43, %44 : vector<1x8xi32>
    %cst_17 = arith.constant -9.99999995E+11 : f32
    %cst_18 = arith.constant 0.000000e+00 : f32
    %46 = vector.broadcast %cst_17 : f32 to vector<1x8xf32>
    %47 = vector.broadcast %cst_18 : f32 to vector<1x8xf32>
    %48 = arith.select %45, %46, %47 : vector<1x8xi1>, vector<1x8xf32>
    %49 = vector.broadcast %48 : vector<1x8xf32> to vector<8x8xf32>
    %50 = arith.addf %42, %49 : vector<8x8xf32>
    %cst_19 = arith.constant dense<0xFF800000> : vector<8xf32>
    %51 = vector.multi_reduction <maximumf>, %50, %cst_19 [1] : vector<8x8xf32> to vector<8xf32>
    %52 = vector.shape_cast %51 : vector<8xf32> to vector<8x1xf32>
    %53 = vector.broadcast %52 : vector<8x1xf32> to vector<8x8xf32>
    %54 = arith.subf %50, %53 : vector<8x8xf32>
    %55 = math.exp %54 : vector<8x8xf32>
    %cst_20 = arith.constant dense<0.000000e+00> : vector<8xf32>
    %56 = vector.multi_reduction <add>, %55, %cst_20 [1] : vector<8x8xf32> to vector<8xf32>
    %57 = vector.shape_cast %56 : vector<8xf32> to vector<8x1xf32>
    %58 = tpu.reciprocal %57 {approx = true} : vector<8x1xf32> -> vector<8x1xf32>
    %59 = vector.broadcast %58 : vector<8x1xf32> to vector<8x8xf32>
    %60 = arith.mulf %55, %59 : vector<8x8xf32>
    %61 = arith.truncf %60 : vector<8x8xf32> to vector<8x8xbf16>
    %cst_21 = arith.constant dense<0.000000e+00> : vector<8x8xf32>
    %62 = tpu.matmul %61, %41, %cst_21 {dimension_numbers = #tpu.dot_dimension_numbers<[1], [0], [0], [1], [0, 0, 1, 1], [], []>} : vector<8x8xbf16>, vector<8x8xbf16>, vector<8x8xf32> -> vector<8x8xf32>
    %c1 = arith.constant 1 : index
    %c0_22 = arith.constant 0 : index
    %c0_23 = arith.constant 0 : index
    %63 = vector.load %arg3[%c1, %c0_22, %c0_23] : memref<2x8x8xf32, #tpu.memory_space<vmem>>, vector<1x8x8xf32>
    %64 = vector.shape_cast %63 : vector<1x8x8xf32> to vector<8x8xf32>
    %65 = vector.shape_cast %62 : vector<8x8xf32> to vector<1x8x8xf32>
    tpu.vector_store %arg3[%c1, %c0_22, %c0_23], %65 {strides = array<i32>} : memref<2x8x8xf32, #tpu.memory_space<vmem>>, vector<1x8x8xf32>,
    return
  }
}

</mosaic_0001>

<bundles_post_ra>
// kernel: tpu_custom_call.1
= control target key start
LH: loop header
LB: loop body
LE: loop exit
PB: predicated region body
PF: predicated region fallthrough
CT: control target
= control target key end

     0   :  { %v421_v1 = vmov 0.0   ;;  %vm422_vm0 = vmmov 0   ;;  %s497_s0 = inlined_call_operand.vmem [shape: f32[2,8,32], index: 0, kind: input, shape index: {}]   ;;  %s498_s1 = inlined_call_operand.vmem [shape: s32[2,8], index: 1, kind: input, shape index: {}]   ;;  %s499_s2 = inlined_call_operand.vmem [shape: bf16[32,24], index: 2, kind: input, shape index: {}]   ;;  %s500_s3 = inlined_call_operand.hbm [shape: f32[2,8,8], index: 3, kind: output, shape index: {}]  }
   0x1   :  { %v389_v0 = vld [vmem:[%s499_s2 + $0x8] sm:$0xff]   ;;  %350 = vmatprep.subr.bf16.mxu0 %v421_v1  ;;  %v390_v2 = vld [vmem:[%s499_s2] sm:$0xff]   ;;  %358 = vmatprep.subr.bf16.mxu1 %v421_v1 }
   0x2   :  { %351 = vmatpush3.bf16.msra.mxu0 %v389_v0  ;;  %354 = vmatprep.mubr.msk.bf16.mxu0 %vm422_vm0, %v421_v1  ;;  %v16_v3 = vld [vmem:[%s497_s0] sm:$0xff]  ;;  %v17_v4 = vld [vmem:[%s497_s0 + $0x8] sm:$0xff] }
   0x3   :  { %8 = vsyncpa [#allocation3], 0  ;;  %352 = vmatprep.subr.bf16.mxu0 %v421_v1  ;;  %360 = vmatprep.mubr.msk.bf16.mxu1 %vm422_vm0, %v421_v1  ;;  %v18_v5 = vpack.c.bf16 %v17_v4, %v16_v3  ;;  %vm35_vm1 = vcmask 261120   ;;  %s423_s2 = smov 120   ;;  %vm91_vm2 = vcmask 64512   ;;  %v84_v16 = vlaneseq  ;;  %s425_s21 = smov [#allocation2]  }
   0x4   :  { %v80_v17 = vld [vmem:[%s498_s1] sm:$0x3]  ;;  %s424_s1 = smov 112   ;;  %vm155_vm4 = vcmask 1043456   ;;  %s321_s22 = sshll.u32 %s425_s21, 4  ;;  %s322_s22 = int_to_ptr.vmem [resolvable:$true] %s321_s22 }
   0x5   :  { %v85_v18 = vshrl.u32 %v84_v16, 7  ;;  %vm82_vm3 = vcmp.eq.s32.totalorder %v80_v17, 0  ;;  %s399_s23 = scalar_lea.vmem %s322_s22, 256  ;;  %p404_p1 = scmp.lt.s32.totalorder %s322_s22, %s322_s22 }
   0x6   :  { %353 = vmatpush3.bf16.msra.mxu0 %v390_v2  ;;  %v83_v20 = vsel %vm82_vm3, -1e+12, %v421_v1  ;;  %p400_p0 = scmp.ne.s32.totalorder %s322_s22, %s399_s23  ;;  %p405_p2 = scmp.lt.s32.totalorder %s399_s23, %s399_s23 }
   0x7   :  { %364 = vmatprep.subr.bf16.mxu0 %v421_v1  ;;  %v86_v19 = vsub.s32 0, %v85_v18  ;;  %v203_v24 = vsub.s32 1, %v85_v18 }
   0x8   :  { %p406_p3 = por %p405_p2, %p404_p1 }
   0x9   :  { %355 = vmatmul.mubr.msk.bf16.vlgmr.msra.gmra.mxu0 %vm35_vm1, %v18_v5  ;;  %v87_v21 = vrot.slane %v83_v20, %v86_v19  ;;  %v204_v28 = vrot.slane %v83_v20, %v203_v24 }
   0xa   :  { %366 = vmatprep.mubr.msk.bf16.mxu0 %vm422_vm0, %v421_v1  ;;  %p407_p4 = pnand %p406_p3, %p400_p0 }
  0xc9   :  { %v73_v6 = vpop.f32.mrf.mxu0 }
  0xca   :  { %v81_v7 = vpack.c.bf16 %v73_v6, %v73_v6 }
  0xcb   :  { %v356_v8 = vpop.f32.mrf.mxu0 }
  0xcc   :  { %89 = vrot.lane.b32.xlu0 %v81_v7, %s423_s2 }
  0xcd   :  { %v76_v9 = vpop.f32.mrf.mxu0 }
  0xce   :  { %v200_v10 = vpack.c.bf16 %v76_v9, %v76_v9 }
  0xcf   :  { %v357_v11 = vpop.f32.mrf.mxu0 }
  0xd0   :  { %206 = vrot.lane.b32.xlu0 %v200_v10, %s423_s2 }
 0x13e   :  { %v90_v12 = vpop.permute.xlu0 %89 }
 0x13f   :  { %v96_v13 = vsel %vm91_vm2, %v90_v12, 0 }
 0x140   :  { %359 = vmatpush3.bf16.xpose.msra.mxu1 %v96_v13 }
 0x141   :  { %370 = vmatprep.subr.bf16.mxu1 %v421_v1 }
 0x142   :  { %v207_v14 = vpop.permute.xlu0 %206 }
 0x143   :  { %v212_v15 = vsel %vm91_vm2, %v207_v14, 0 }
 0x147   :  { %361 = vmatmul.mubr.msk.bf16.vlgmr.msra.gmra.mxu1 %vm91_vm2, %v81_v7 }
 0x148   :  { %371 = vmatpush3.bf16.xpose.msra.mxu1 %v212_v15  ;;  %372 = vmatprep.mubr.msk.bf16.mxu1 %vm422_vm0, %v421_v1 }
 0x14f   :  { %373 = vmatmul.mubr.msk.bf16.vlgmr.msra.gmra.mxu1 %vm91_vm2, %v200_v10 }
 0x207   :  { %v132_v22 = vpop.f32.mrf.mxu1 }
 0x208   :  { %v133_v23 = vadd.f32 %v132_v22, %v87_v21 }
 0x209   :  { %v362_v25 = vpop.f32.mrf.mxu1 }
 0x20a   :  { %v138_v26 = vsel %vm91_vm2, %v133_v23, -inf }
 0x20b   :  { %139 = vmax.xlane.f32.xlu1 %v138_v26  ;;  %v135_v27 = vpop.f32.mrf.mxu1 }
 0x20d   :  { %v363_v29 = vpop.f32.mrf.mxu1 }
 0x20f   :  { %v248_v30 = vpop.f32.mrf.mxu1 }
 0x210   :  { %v249_v31 = vadd.f32 %v248_v30, %v204_v28 }
 0x211   :  { %v374_v32 = vpop.f32.mrf.mxu1 }
 0x212   :  { %v254_v33 = vsel %vm91_vm2, %v249_v31, -inf }
 0x213   :  { %255 = vmax.xlane.f32.xlu1 %v254_v33  ;;  %v251_v34 = vpop.f32.mrf.mxu1 }
 0x215   :  { %v375_v35 = vpop.f32.mrf.mxu1 }
 0x224   :  { %150 = vrot.lane.b32.xlu1 %v81_v7, %s424_s1 }
 0x294   :  { %v140_v36 = vpop.xlane.xlu1 %139 }
 0x295   :  { %v141_v37 = vsub.f32 %v133_v23, %v140_v36 }
 0x297   :  { %v142_v38 = vmul.f32 1.442695, %v141_v37 }
 0x299   :  { %391 = vpow2.f32 %v142_v38 }
 0x29c   :  { %v256_v39 = vpop.xlane.xlu1 %255 }
 0x29d   :  { %v257_v40 = vsub.f32 %v249_v31, %v256_v39 }
 0x29f   :  { %v258_v41 = vmul.f32 1.442695, %v257_v40 }
 0x2a0   :  { %v151_v42 = vpop.permute.xlu1 %150 }
 0x2a1   :  { %393 = vpow2.f32 %v258_v41  ;;  %v157_v43 = vsel %vm155_vm4, %v151_v42, 0 }
 0x2a2   :  { %365 = vmatpush3.bf16.msra.mxu0 %v157_v43 }
 0x2a3   :  { %376 = vmatprep.subr.bf16.mxu0 %v421_v1 }
 0x2a6   :  { %v392_v44 = vpop.eup %391 }
 0x2a7   :  { %v144_v45 = vsel %vm91_vm2, %v392_v44, 0.0 }
 0x2a8   :  { %145 = vadd.xlane.f32.xlu0 %v144_v45 }
 0x2ae   :  { %v394_v46 = vpop.eup %393 }
 0x2af   :  { %v260_v47 = vsel %vm91_vm2, %v394_v46, 0.0 }
 0x2b0   :  { %261 = vadd.xlane.f32.xlu1 %v260_v47 }
 0x2c1   :  { %266 = vrot.lane.b32.xlu1 %v200_v10, %s424_s1 }
 0x331   :  { %v146_v48 = vpop.xlane.xlu0 %145 }
 0x332   :  { %395 = vrcp.f32 %v146_v48 }
 0x339   :  { %v262_v49 = vpop.xlane.xlu1 %261 }
 0x33a   :  { %397 = vrcp.f32 %v262_v49 }
 0x33d   :  { %v267_v52 = vpop.permute.xlu1 %266 }
 0x33e   :  { %v272_v54 = vsel %vm155_vm4, %v267_v52, 0 }
 0x33f   :  { %v396_v50 = vpop.eup %395 }
 0x340   :  { %v148_v51 = vmul.f32 %v396_v50, %v392_v44 }
 0x342   :  { %v149_v53 = vpack.c.bf16 %v148_v51, %v148_v51 }
 0x344   :  { %367 = vmatmul.mubr.msk.bf16.vlgmr.msra.gmra.mxu0 %vm91_vm2, %v149_v53 }
 0x345   :  { %377 = vmatpush3.bf16.msra.mxu0 %v272_v54  ;;  %378 = vmatprep.mubr.msk.bf16.mxu0 %vm422_vm0, %v421_v1 }
 0x347   :  { %v398_v55 = vpop.eup %397 }
 0x348   :  { %v264_v56 = vmul.f32 %v398_v55, %v394_v46 }
 0x34a   :  { %v265_v57 = vpack.c.bf16 %v264_v56, %v264_v56 }
 0x34c   :  { %379 = vmatmul.mubr.msk.bf16.vlgmr.msra.gmra.mxu0 %vm91_vm2, %v265_v57 }
 0x404   :  { %v193_v58 = vpop.f32.mrf.mxu0 }
 0x405   :  { %199 = vst.msk [vmem:[#allocation2] sm:$0xff] %vm91_vm2, %v193_v58 }
 0x406   :  { %v368_v59 = vpop.f32.mrf.mxu0 }
 0x408   :  { %v196_v60 = vpop.f32.mrf.mxu0 }
 0x40a   :  { %v369_v61 = vpop.f32.mrf.mxu0 }
 0x40c   :  { %v308_v62 = vpop.f32.mrf.mxu0 }
 0x40d   :  { %315 = vst.msk [vmem:[#allocation2 + $0x8] sm:$0xff] %vm91_vm2, %v308_v62 }
 0x40e   :  { %v380_v63 = vpop.f32.mrf.mxu0 }
 0x40f   :  { %410 = shalt.err (!%p407_p4)
}
 0x410   :  { %s426_s24 = smov 128   ;;  %s427_s25 = smov 8   ;;  %v311_v0 = vpop.f32.mrf.mxu0 }
 0x411   :  { %327 = dma.vmem_to_hbm [thread:$0]  %s322_s22, 256, %s500_s3, [#allocation3], %s426_s24, %s426_s24, %s427_s25  }
 0x412   :  { %v381_v1 = vpop.f32.mrf.mxu0 }
 0x413   :  { %419 = dma.done.wait [#allocation3], 256  }
 0x414   :  { %420 = vsyncadd [#allocation3], 4294967040 }
 0x415   :  { %331 = vsyncpa [#allocation3], 1 }

</bundles_post_ra>
